<compile_context>
chip_gen: v7x
topology: tpu7x:2x2x1
jax: 0.10.0
libtpu: 0.0.40
codegen_flags: <defaults>
</compile_context>

<pallas_src>
import functools

import jax
import jax.numpy as jnp
from jax.experimental import pallas as pl
from jax.experimental.pallas import tpu as pltpu

LANE = 128


def _round_up(x, m):
    return (x + m - 1) // m * m


def _pad2(a, rows, cols):
    return jnp.pad(a, ((0, rows - a.shape[0]), (0, cols - a.shape[1])))


def _spec(shape, index_map, buffers=None):
    """BlockSpec, optionally with an explicit buffer count (falls back cleanly)."""
    if buffers is not None and hasattr(pl, "Buffered"):
        try:
            return pl.BlockSpec(shape, index_map, pipeline_mode=pl.Buffered(buffers))
        except TypeError:
            pass  # older BlockSpec signature without pipeline_mode
    return pl.BlockSpec(shape, index_map)


def _vmem_limit(bytes_needed, headroom=8 << 20):
    # Per-call scoped-VMEM limit from the real double-buffered footprint plus
    # headroom, clamped to stay portable across 128 MiB (v5e/v6e) and 64 MiB
    # (v7x) parts.
    return int(min(max(bytes_needed + headroom, 32 << 20), 56 << 20))


# ---------------------------------------------------------------------------
# Kernels
# ---------------------------------------------------------------------------

def _linear_relu_kernel(x_ref, w_ref, b_ref, h_ref, hb_ref):
    # h = relu(x @ W_in + b_in); dropout is identity in eval mode.
    h = jnp.maximum(
        jnp.dot(x_ref[...], w_ref[...], preferred_element_type=jnp.float32)
        + b_ref[...], 0.0)
    h_ref[...] = h
    hb_ref[...] = h.astype(jnp.bfloat16)


def _step_kernel(adj_ref, hsrc_ref, hdst_ref, deg_ref, w_msg_ref, b_msg_ref,
                 w_i_ref, w_h_ref, b_i_ref, b_h_ref,
                 hnew_ref, hnew_bf_ref, acc_ref, *, tm):
    # grid = (dst node tiles, src node tiles); axis 1 is the reduction axis.
    k = pl.program_id(1)

    @pl.when(k == 0)
    def _():
        acc_ref[...] = jnp.zeros_like(acc_ref)

    # acc += A[i, k] @ h[k]   (int8 0/1 adjacency upcast to bf16; f32 accum)
    a = adj_ref[...].astype(jnp.bfloat16)
    i0 = pl.multiple_of(k * tm, tm)
    src = hsrc_ref[pl.ds(i0, tm), :]          # resident (Np, H) bf16 buffer
    acc_ref[...] += jnp.dot(a, src, preferred_element_type=jnp.float32)

    @pl.when(k == pl.num_programs(1) - 1)
    def _():
        H = hdst_ref.shape[1]
        # Fused DGL edge linear:  A @ (h W_msg + b_msg)
        #                       = (A @ h) @ W_msg + deg (x) b_msg
        agg = (jnp.dot(acc_ref[...].astype(jnp.bfloat16), w_msg_ref[...],
                       preferred_element_type=jnp.float32)
               + deg_ref[...] * b_msg_ref[...])
        h = hdst_ref[...]
        # Fused GRU gates (PyTorch nn.GRUCell order r, z, n):
        #   gi = agg @ [W_ir|W_iz|W_in] + [b_ir+b_hr | b_iz+b_hz | b_in]
        #   gh = h   @ [W_hr|W_hz|W_hn] + [0 | 0 | b_hn]
        gi = jnp.dot(agg.astype(jnp.bfloat16), w_i_ref[...],
                     preferred_element_type=jnp.float32) + b_i_ref[...]
        gh = jnp.dot(h.astype(jnp.bfloat16), w_h_ref[...],
                     preferred_element_type=jnp.float32) + b_h_ref[...]
        r = jax.nn.sigmoid(gi[:, :H] + gh[:, :H])
        z = jax.nn.sigmoid(gi[:, H:2 * H] + gh[:, H:2 * H])
        n = jnp.tanh(gi[:, 2 * H:] + r * gh[:, 2 * H:])
        h_new = (1.0 - z) * n + z * h
        hnew_ref[...] = h_new
        hnew_bf_ref[...] = h_new.astype(jnp.bfloat16)


def _linear_out_kernel(h_ref, w_ref, b_ref, o_ref):
    o_ref[...] = (jnp.dot(h_ref[...], w_ref[...],
                          preferred_element_type=jnp.float32) + b_ref[...])


# ---------------------------------------------------------------------------
# Wrapper
# ---------------------------------------------------------------------------

def gatedgcn_forward(x, adj, params, *, n_steps=3, tile_n=256):
    """Full GatedGCN forward using node-tiled Pallas kernels."""
    N, in_feats = x.shape
    hidden = params["w_in"].shape[1]
    out_dim = params["w_out"].shape[1]

    H = _round_up(hidden, LANE)
    IN = _round_up(in_feats, LANE)
    OUT = _round_up(out_dim, LANE)
    TM = min(tile_n, _round_up(N, LANE))      # multiple of 128, clamped to graph
    Np = _round_up(N, TM)
    nt = Np // TM

    f32, bf16 = jnp.float32, jnp.bfloat16

    # -- pad / fuse / cast parameters (zero-padding is exact) -----------------
    x_p = _pad2(x.astype(f32), Np, IN).astype(bf16)
    adj_f = _pad2(adj.astype(f32), Np, Np)
    deg = jnp.sum(adj_f, axis=1, keepdims=True)            # (Np, 1) in-degree
    adj_i8 = adj_f.astype(jnp.int8)                         # 0/1 exact in int8

    w_in = _pad2(params["w_in"], IN, H).astype(bf16)
    b_in = _pad2(params["b_in"], 1, H).astype(f32)
    w_msg = _pad2(params["w_msg"], H, H).astype(bf16)
    b_msg = _pad2(params["b_msg"], 1, H).astype(f32)
    w_out = _pad2(params["w_out"], H, OUT).astype(bf16)
    b_out = _pad2(params["b_out"], 1, OUT).astype(f32)

    w_i = jnp.concatenate(
        [_pad2(params["w_ir"], H, H), _pad2(params["w_iz"], H, H),
         _pad2(params["w_inn"], H, H)], axis=1).astype(bf16)          # (H, 3H)
    w_h = jnp.concatenate(
        [_pad2(params["w_hr"], H, H), _pad2(params["w_hz"], H, H),
         _pad2(params["w_hn"], H, H)], axis=1).astype(bf16)           # (H, 3H)
    b_i = jnp.concatenate(
        [_pad2(params["b_ir"] + params["b_hr"], 1, H),
         _pad2(params["b_iz"] + params["b_hz"], 1, H),
         _pad2(params["b_inn"], 1, H)], axis=1).astype(f32)           # (1, 3H)
    b_h = jnp.concatenate(
        [jnp.zeros((1, 2 * H), f32),
         _pad2(params["b_hn"], 1, H)], axis=1).astype(f32)            # (1, 3H)

    # -- linear_in + ReLU ------------------------------------------------------
    lin_in_bytes = 2 * (TM * IN * 2 + IN * H * 2 + 8 * H * 4
                        + TM * H * 4 + TM * H * 2)
    h, h_bf = pl.pallas_call(
        _linear_relu_kernel,
        out_shape=(jax.ShapeDtypeStruct((Np, H), f32),
                   jax.ShapeDtypeStruct((Np, H), bf16)),
        grid_spec=pltpu.PrefetchScalarGridSpec(
            num_scalar_prefetch=0, grid=(nt,),
            in_specs=[pl.BlockSpec((TM, IN), lambda i: (i, 0)),
                      pl.BlockSpec((IN, H), lambda i: (0, 0)),
                      pl.BlockSpec((1, H), lambda i: (0, 0))],
            out_specs=[pl.BlockSpec((TM, H), lambda i: (i, 0)),
                       pl.BlockSpec((TM, H), lambda i: (i, 0))]),
        compiler_params=pltpu.CompilerParams(
            dimension_semantics=("parallel",),
            vmem_limit_bytes=_vmem_limit(lin_in_bytes)),
        cost_estimate=pl.CostEstimate(
            flops=2 * Np * IN * H, transcendentals=0,
            bytes_accessed=2 * Np * IN + 2 * IN * H + 6 * Np * H),
    )(x_p, w_in, b_in)

    # -- per-step fused aggregation + message linear + GRU update -------------
    step_bytes = (2 * TM * TM                  # int8 adjacency tile, x2 buffers
                  + 2 * Np * H * 2             # resident bf16 h (conservative x2)
                  + 2 * (TM * H * 4 + TM * LANE * 4)
                  + 2 * (H * H * 2 + 8 * H * 4)
                  + 2 * 2 * (H * 3 * H * 2) + 2 * 2 * (8 * 3 * H * 4)
                  + 2 * (TM * H * 4 + TM * H * 2)
                  + TM * H * 4)                # f32 accumulator scratch
    step_call = pl.pallas_call(
        functools.partial(_step_kernel, tm=TM),
        out_shape=(jax.ShapeDtypeStruct((Np, H), f32),
                   jax.ShapeDtypeStruct((Np, H), bf16)),
        grid_spec=pltpu.PrefetchScalarGridSpec(
            num_scalar_prefetch=0, grid=(nt, nt),
            in_specs=[pl.BlockSpec((TM, TM), lambda i, k: (i, k)),        # A int8
                      _spec((Np, H), lambda i, k: (0, 0), buffers=1),     # h src
                      pl.BlockSpec((TM, H), lambda i, k: (i, 0)),         # h dst
                      pl.BlockSpec((TM, 1), lambda i, k: (i, 0)),         # deg
                      _spec((H, H), lambda i, k: (0, 0), buffers=1),      # W_msg
                      pl.BlockSpec((1, H), lambda i, k: (0, 0)),          # b_msg
                      _spec((H, 3 * H), lambda i, k: (0, 0), buffers=1),  # W_i
                      _spec((H, 3 * H), lambda i, k: (0, 0), buffers=1),  # W_h
                      pl.BlockSpec((1, 3 * H), lambda i, k: (0, 0)),      # b_i
                      pl.BlockSpec((1, 3 * H), lambda i, k: (0, 0))],     # b_h
            out_specs=[pl.BlockSpec((TM, H), lambda i, k: (i, 0)),
                       pl.BlockSpec((TM, H), lambda i, k: (i, 0))],
            scratch_shapes=[pltpu.VMEM((TM, H), f32)]),
        compiler_params=pltpu.CompilerParams(
            dimension_semantics=("parallel", "arbitrary"),
            vmem_limit_bytes=_vmem_limit(step_bytes)),
        cost_estimate=pl.CostEstimate(
            flops=2 * Np * Np * H + 2 * Np * H * H + 4 * Np * H * 3 * H,
            transcendentals=3 * Np * H,
            bytes_accessed=Np * Np + 2 * Np * H + 4 * Np * H + 4 * Np
            + 2 * H * H + 4 * H * 3 * H + 6 * Np * H),
    )

    for _ in range(n_steps):
        h, h_bf = step_call(adj_i8, h_bf, h, deg, w_msg, b_msg,
                            w_i, w_h, b_i, b_h)

    # -- linear_out (lane-dense 128-wide output, sliced back in the wrapper) --
    lin_out_bytes = 2 * (TM * H * 2 + H * OUT * 2 + 8 * OUT * 4 + TM * OUT * 4)
    out = pl.pallas_call(
        _linear_out_kernel,
        out_shape=jax.ShapeDtypeStruct((Np, OUT), f32),
        grid_spec=pltpu.PrefetchScalarGridSpec(
            num_scalar_prefetch=0, grid=(nt,),
            in_specs=[pl.BlockSpec((TM, H), lambda i: (i, 0)),
                      pl.BlockSpec((H, OUT), lambda i: (0, 0)),
                      pl.BlockSpec((1, OUT), lambda i: (0, 0))],
            out_specs=pl.BlockSpec((TM, OUT), lambda i: (i, 0))),
        compiler_params=pltpu.CompilerParams(
            dimension_semantics=("parallel",),
            vmem_limit_bytes=_vmem_limit(lin_out_bytes)),
        cost_estimate=pl.CostEstimate(
            flops=2 * Np * H * OUT, transcendentals=0,
            bytes_accessed=2 * Np * H + 2 * H * OUT + 4 * Np * OUT),
    )(h_bf, w_out, b_out)

    return out[:N, :out_dim]


# ---------------------------------------------------------------------------
# Parameter init (weights pre-transposed to (in, out))
# ---------------------------------------------------------------------------

def init_params(key, in_feats, hidden_dim, out_dim):
    ks = jax.random.split(key, 20)
    s = 0.1

    def w(k, shape):
        return (s * jax.random.normal(k, shape)).astype(jnp.float32)

    return {
        # linear_in: (in_feats -> hidden)
        "w_in": w(ks[0], (in_feats, hidden_dim)),
        "b_in": w(ks[1], (1, hidden_dim)),
        # GatedGraphConv edge-type-0 linear: (hidden -> hidden)
        "w_msg": w(ks[2], (hidden_dim, hidden_dim)),
        "b_msg": w(ks[3], (1, hidden_dim)),
        # GRUCell input weights (r, z, n)
        "w_ir": w(ks[4], (hidden_dim, hidden_dim)),
        "w_iz": w(ks[5], (hidden_dim, hidden_dim)),
        "w_inn": w(ks[6], (hidden_dim, hidden_dim)),
        # GRUCell hidden weights (r, z, n)
        "w_hr": w(ks[7], (hidden_dim, hidden_dim)),
        "w_hz": w(ks[8], (hidden_dim, hidden_dim)),
        "w_hn": w(ks[9], (hidden_dim, hidden_dim)),
        # GRUCell biases (b_ih and b_hh, matching nn.GRUCell)
        "b_ir": w(ks[10], (1, hidden_dim)),
        "b_iz": w(ks[11], (1, hidden_dim)),
        "b_inn": w(ks[12], (1, hidden_dim)),
        "b_hr": w(ks[13], (1, hidden_dim)),
        "b_hz": w(ks[14], (1, hidden_dim)),
        "b_hn": w(ks[15], (1, hidden_dim)),
        # linear_out: (hidden -> out_dim)
        "w_out": w(ks[16], (hidden_dim, out_dim)),
        "b_out": w(ks[17], (1, out_dim)),
    }


if __name__ == "__main__":
    key = jax.random.PRNGKey(0)
    k_x, k_p = jax.random.split(key)

    # Small synthetic graph: N nodes, bidirectional ring.
    N = 16
    in_feats = 8
    hidden_dim = 32
    out_dim = 4
    n_steps = 3

    x = jax.random.normal(k_x, (N, in_feats), dtype=jnp.float32)

    # adjacency with A[dst, src] = 1 for edges src->dst (ring, both directions)
    src = jnp.concatenate([jnp.arange(N), jnp.arange(N)])
    dst = jnp.concatenate([(jnp.arange(N) + 1) % N, (jnp.arange(N) - 1) % N])
    adj = jnp.zeros((N, N), dtype=jnp.float32).at[dst, src].set(1.0)

    params = init_params(k_p, in_feats, hidden_dim, out_dim)

    out = gatedgcn_forward(x, adj, params, n_steps=n_steps)
    jax.block_until_ready(out)
    assert out.shape == (N, out_dim)
    print("KERNEL_OK")
</pallas_src>

<mosaic_0001>
module attributes {stable_mosaic.version = 11 : i64} {
  func.func @_linear_relu_kernel(%arg0: i32, %arg1: memref<128x128xbf16, #tpu.memory_space<vmem>>, %arg2: memref<128x128xbf16, #tpu.memory_space<vmem>>, %arg3: memref<1x128xf32, #tpu.memory_space<vmem>>, %arg4: memref<128x128xf32, #tpu.memory_space<vmem>>, %arg5: memref<128x128xbf16, #tpu.memory_space<vmem>>) attributes {dimension_semantics = [#tpu.dimension_semantics<parallel>], iteration_bounds = array<i64: 1>, scalar_prefetch = 0 : i64, scratch_operands = 0 : i64, tpu.core_type = #tpu.core_type<tc>, window_params = [{transform_indices = @transform_0, window_bounds = array<i64: 128, 128>}, {pipeline_mode = #tpu.pipeline_mode<synchronous>, transform_indices = @transform_1, window_bounds = array<i64: 128, 128>}, {pipeline_mode = #tpu.pipeline_mode<synchronous>, transform_indices = @transform_2, window_bounds = array<i64: 1, 128>}, {transform_indices = @transform_3, window_bounds = array<i64: 128, 128>}, {transform_indices = @transform_4, window_bounds = array<i64: 128, 128>}]} {
    %c0 = arith.constant 0 : index
    %c0_0 = arith.constant 0 : index
    %0 = vector.load %arg1[%c0, %c0_0] : memref<128x128xbf16, #tpu.memory_space<vmem>>, vector<128x128xbf16>
    %c0_1 = arith.constant 0 : index
    %c0_2 = arith.constant 0 : index
    %1 = vector.load %arg2[%c0_1, %c0_2] : memref<128x128xbf16, #tpu.memory_space<vmem>>, vector<128x128xbf16>
    %cst = arith.constant dense<0.000000e+00> : vector<128x128xf32>
    %2 = tpu.matmul %0, %1, %cst {dimension_numbers = #tpu.dot_dimension_numbers<[1], [0], [0], [1], [0, 0, 1, 1], [], []>} : vector<128x128xbf16>, vector<128x128xbf16>, vector<128x128xf32> -> vector<128x128xf32>
    %c0_3 = arith.constant 0 : index
    %c0_4 = arith.constant 0 : index
    %3 = vector.load %arg3[%c0_3, %c0_4] : memref<1x128xf32, #tpu.memory_space<vmem>>, vector<1x128xf32>
    %4 = vector.broadcast %3 : vector<1x128xf32> to vector<128x128xf32>
    %5 = arith.addf %2, %4 : vector<128x128xf32>
    %cst_5 = arith.constant 0.000000e+00 : f32
    %6 = vector.broadcast %cst_5 : f32 to vector<128x128xf32>
    %7 = arith.maximumf %5, %6 : vector<128x128xf32>
    %c0_6 = arith.constant 0 : index
    %c0_7 = arith.constant 0 : index
    %8 = vector.load %arg4[%c0_6, %c0_7] : memref<128x128xf32, #tpu.memory_space<vmem>>, vector<128x128xf32>
    tpu.vector_store %arg4[%c0_6, %c0_7], %7 {strides = array<i32>} : memref<128x128xf32, #tpu.memory_space<vmem>>, vector<128x128xf32>,
    %9 = arith.truncf %7 : vector<128x128xf32> to vector<128x128xbf16>
    %c0_8 = arith.constant 0 : index
    %c0_9 = arith.constant 0 : index
    %10 = vector.load %arg5[%c0_8, %c0_9] : memref<128x128xbf16, #tpu.memory_space<vmem>>, vector<128x128xbf16>
    tpu.vector_store %arg5[%c0_8, %c0_9], %9 {strides = array<i32>} : memref<128x128xbf16, #tpu.memory_space<vmem>>, vector<128x128xbf16>,
    return
  }
  func.func @transform_0(%arg0: i32) -> (i32, i32) {
    %c0_i32 = arith.constant 0 : i32
    %c0_i32_0 = arith.constant 0 : i32
    return %arg0, %c0_i32 : i32, i32
  }
  func.func @transform_1(%arg0: i32) -> (i32, i32) {
    %c0_i32 = arith.constant 0 : i32
    %c0_i32_0 = arith.constant 0 : i32
    %c0_i32_1 = arith.constant 0 : i32
    return %c0_i32, %c0_i32_0 : i32, i32
  }
  func.func @transform_2(%arg0: i32) -> (i32, i32) {
    %c0_i32 = arith.constant 0 : i32
    %c0_i32_0 = arith.constant 0 : i32
    %c0_i32_1 = arith.constant 0 : i32
    return %c0_i32, %c0_i32_0 : i32, i32
  }
  func.func @transform_3(%arg0: i32) -> (i32, i32) {
    %c0_i32 = arith.constant 0 : i32
    %c0_i32_0 = arith.constant 0 : i32
    return %arg0, %c0_i32 : i32, i32
  }
  func.func @transform_4(%arg0: i32) -> (i32, i32) {
    %c0_i32 = arith.constant 0 : i32
    %c0_i32_0 = arith.constant 0 : i32
    return %arg0, %c0_i32 : i32, i32
  }
}

</mosaic_0001>

<bundles_post_ra>
// kernel: tpu_custom_call.1
= control target key start
LH: loop header
LB: loop body
LE: loop exit
PB: predicated region body
PF: predicated region fallthrough
CT: control target
= control target key end

     0   :  { %10 = vsyncpa [#allocation3], 0  ;;  %s812_s0 = inlined_call_operand.hbm [shape: bf16[128,128], index: 0, kind: input, shape index: {}]   ;;  %s813_s1 = inlined_call_operand.hbm [shape: bf16[128,128], index: 1, kind: input, shape index: {}]   ;;  %s814_s2 = inlined_call_operand.vmem [shape: f32[1,128], index: 2, kind: input, shape index: {}]   ;;  %s815_s3 = inlined_call_operand.hbm [shape: f32[128,128], index: 3, kind: output, shape index: {0}]   ;;  %s816_s4 = inlined_call_operand.hbm [shape: bf16[128,128], index: 4, kind: output, shape index: {1}]  }
   0x1   :  { %11 = vsyncpa [#allocation6], 0 }
   0x2   :  { %12 = vsyncpa [#allocation4], 0 }
   0x3   :  { %13 = vsyncpa [#allocation9], 0  ;;  %s705_s15 = smov [#allocation2]   ;;  %s609_s19 = scalar_lea.hbm %s812_s0, 1024 }
   0x4   :  { %s19_s16 = sshll.u32 %s705_s15, 4  ;;  %p610_p0 = scmp.ne.s32.totalorder %s812_s0, %s609_s19  ;;  %s20_s16 = int_to_ptr.vmem [resolvable:$true] %s19_s16 }
   0x5   :  { %p613_p1 = scmp.lt.u32.totalorder %s609_s19, %s812_s0 }
   0x7   :  { %p615_p2 = pnand %p613_p1, %p610_p0 }
   0x9   :  { %618 = shalt.err (!%p615_p2)
}
   0xa   :  { %s619_s24 = scalar_lea.vmem %s20_s16, 1024  ;;  %p624_p4 = scmp.lt.s32.totalorder %s20_s16, %s20_s16 }
   0xb   :  { %p620_p3 = scmp.ne.s32.totalorder %s20_s16, %s619_s24  ;;  %p625_p5 = scmp.lt.s32.totalorder %s619_s24, %s619_s24 }
   0xd   :  { %p626_p6 = por %p625_p5, %p624_p4 }
   0xf   :  { %p627_p7 = pnand %p626_p6, %p620_p3 }
  0x11   :  { %630 = shalt.err (!%p627_p7)
}
  0x12   :  { %s706_s25 = smov 64   ;;  %s707_s26 = smov 4  }
  0x13   :  { %25 = dma.hbm_to_vmem [thread:$0]  %s812_s0, 1024, %s20_s16, [#allocation3], %s706_s25, %s706_s25, %s707_s26  }
  0x14   :  { %s708_s29 = smov [#allocation5]   ;;  %s631_s7 = scalar_lea.hbm %s813_s1, 1024 }
  0x15   :  { %s31_s30 = sshll.u32 %s708_s29, 4  ;;  %p632_p8 = scmp.ne.s32.totalorder %s813_s1, %s631_s7  ;;  %s32_s30 = int_to_ptr.vmem [resolvable:$true] %s31_s30 }
  0x16   :  { %p635_p9 = scmp.lt.u32.totalorder %s631_s7, %s813_s1 }
  0x18   :  { %p637_p10 = pnand %p635_p9, %p632_p8 }
  0x1a   :  { %640 = shalt.err (!%p637_p10)
}
  0x1b   :  { %s641_s12 = scalar_lea.vmem %s32_s30, 1024  ;;  %p646_p12 = scmp.lt.s32.totalorder %s32_s30, %s32_s30 }
  0x1c   :  { %p642_p11 = scmp.ne.s32.totalorder %s32_s30, %s641_s12  ;;  %p647_p13 = scmp.lt.s32.totalorder %s641_s12, %s641_s12 }
  0x1e   :  { %p648_p0 = por %p647_p13, %p646_p12 }
  0x20   :  { %p649_p1 = pnand %p648_p0, %p642_p11 }
  0x22   :  { %652 = shalt.err (!%p649_p1)
}
  0x23   :  { %37 = dma.hbm_to_vmem [thread:$0]  %s813_s1, 1024, %s32_s30, [#allocation6], %s706_s25, %s706_s25, %s707_s26  }
  0x24   :  { %697 = dma.done.wait [#allocation3], 1024  }
  0x25   :  { %698 = vsyncadd [#allocation3], 4294966272 }
  0x26   :  { %699 = dma.done.wait [#allocation6], 1024  }
  0x27   :  { %700 = vsyncadd [#allocation6], 4294966272  ;;  %v593_v0 = vld [vmem:[#allocation5] sm:$0xff]   ;;  %v594_v1 = vld [vmem:[#allocation5 + $0x8] sm:$0xff]   ;;  %s710_s16 = smov [#allocation8]  }
  0x28   :  { %537 = vmatprep.subr.bf16.mxu0 %v593_v0  ;;  %569 = vmatprep.subr.bf16.mxu1 %v593_v0  ;;  %v595_v2 = vld [vmem:[#allocation5 + $0x10] sm:$0xff]   ;;  %v596_v3 = vld [vmem:[#allocation5 + $0x18] sm:$0xff]   ;;  %v601_v4 = vld [vmem:[#allocation2] sm:$0xff]   ;;  %s408_s17 = sshll.u32 %s710_s16, 4  ;;  %s773_s17 = int_to_ptr.vmem [resolvable:$true] %s408_s17 }
  0x29   :  { %538 = vmatpush3.bf16.msra.mxu0 %v593_v0  ;;  %577 = vmatpush3.bf16.msra.mxu1 %v593_v0  ;;  %v602_v5 = vld [vmem:[#allocation2 + $0x20] sm:$0xff]   ;;  %v598_v7 = vld [vmem:[#allocation5 + $0x28] sm:$0xff]   ;;  %v599_v8 = vld [vmem:[#allocation5 + $0x30] sm:$0xff]  }
  0x2a   :  { %539 = vmatprep.subr.bf16.mxu0 %v594_v1  ;;  %570 = vmatprep.subr.bf16.mxu1 %v594_v1  ;;  %v597_v6 = vld [vmem:[#allocation5 + $0x20] sm:$0xff]   ;;  %v600_v9 = vld [vmem:[#allocation5 + $0x38] sm:$0xff]   ;;  %v603_v10 = vld [vmem:[#allocation2 + $0x8] sm:$0xff]  }
  0x2b   :  { %553 = vmatprep.mubr.bf16.mxu0 %v601_v4  ;;  %561 = vmatprep.mubr.bf16.mxu1 %v602_v5  ;;  %v604_v11 = vld [vmem:[#allocation2 + $0x28] sm:$0xff]   ;;  %v605_v12 = vld [vmem:[#allocation2 + $0x10] sm:$0xff]   ;;  %v607_v14 = vld [vmem:[#allocation2 + $0x18] sm:$0xff]  }
  0x2c   :  { %v606_v13 = vld [vmem:[#allocation2 + $0x30] sm:$0xff]   ;;  %v608_v15 = vld [vmem:[#allocation2 + $0x38] sm:$0xff]   ;;  %v425_v16 = vld [vmem:[%s814_s2] ss:$0 sm:$0xff]  ;;  %s709_s2 = smov [#allocation7]  }
  0x2d   :  { %540 = vmatpush3.bf16.msra.mxu0 %v594_v1  ;;  %578 = vmatpush3.bf16.msra.mxu1 %v594_v1  ;;  %s396_s15 = sshll.u32 %s709_s2, 4  ;;  %s771_s15 = int_to_ptr.vmem [resolvable:$true] %s396_s15 }
  0x2e   :  { %541 = vmatprep.subr.bf16.mxu0 %v595_v2  ;;  %571 = vmatprep.subr.bf16.mxu1 %v595_v2  ;;  %s653_s18 = scalar_lea.vmem %s771_s15, 2048  ;;  %p658_p3 = scmp.lt.s32.totalorder %s771_s15, %s771_s15 }
  0x2f   :  { %p654_p2 = scmp.ne.s32.totalorder %s771_s15, %s653_s18  ;;  %p659_p4 = scmp.lt.s32.totalorder %s653_s18, %s653_s18 }
  0x31   :  { %542 = vmatpush3.bf16.msra.mxu0 %v595_v2  ;;  %579 = vmatpush3.bf16.msra.mxu1 %v595_v2  ;;  %p660_p5 = por %p659_p4, %p658_p3 }
  0x32   :  { %543 = vmatprep.subr.bf16.mxu0 %v596_v3  ;;  %572 = vmatprep.subr.bf16.mxu1 %v596_v3 }
  0x33   :  { %p661_p6 = pnand %p660_p5, %p654_p2 }
  0x35   :  { %544 = vmatpush3.bf16.msra.mxu0 %v596_v3  ;;  %580 = vmatpush3.bf16.msra.mxu1 %v596_v3 }
  0x36   :  { %545 = vmatprep.subr.bf16.mxu0 %v597_v6  ;;  %573 = vmatprep.subr.bf16.mxu1 %v597_v6 }
  0x39   :  { %546 = vmatpush3.bf16.msra.mxu0 %v597_v6  ;;  %581 = vmatpush3.bf16.msra.mxu1 %v597_v6 }
  0x3a   :  { %547 = vmatprep.subr.bf16.mxu0 %v598_v7  ;;  %574 = vmatprep.subr.bf16.mxu1 %v598_v7 }
  0x3d   :  { %548 = vmatpush3.bf16.msra.mxu0 %v598_v7  ;;  %582 = vmatpush3.bf16.msra.mxu1 %v598_v7 }
  0x3e   :  { %549 = vmatprep.subr.bf16.mxu0 %v599_v8  ;;  %575 = vmatprep.subr.bf16.mxu1 %v599_v8 }
  0x41   :  { %550 = vmatpush3.bf16.msra.mxu0 %v599_v8  ;;  %583 = vmatpush3.bf16.msra.mxu1 %v599_v8 }
  0x42   :  { %551 = vmatprep.subr.bf16.mxu0 %v600_v9  ;;  %576 = vmatprep.subr.bf16.mxu1 %v600_v9 }
  0x45   :  { %552 = vmatpush3.bf16.msra.mxu0 %v600_v9  ;;  %584 = vmatpush3.bf16.msra.mxu1 %v600_v9 }
  0x48   :  { %554 = vmatmul.mubr.bf16.vlgmr.msra.gmra.mrb[0].mxu0 %v603_v10  ;;  %562 = vmatmul.mubr.bf16.vlgmr.msra.gmra.mrb[0].mxu1 %v604_v11 }
  0x49   :  { %557 = vmatprep.mubr.bf16.mxu0 %v605_v12  ;;  %565 = vmatprep.mubr.bf16.mxu1 %v606_v13 }
  0x50   :  { %558 = vmatmul.mubr.bf16.gmra.mrb[4].mxu0 %v607_v14  ;;  %566 = vmatmul.mubr.bf16.gmra.mrb[4].mxu1 %v608_v15 }
 0x11b   :  { %v555_v17 = vpop.f32.mrb[0].mxu0  ;;  %v563_v18 = vpop.f32.mrb[0].mxu1 }
 0x11c   :  { %v225_v19 = vadd.f32 %v555_v17, %v425_v16  ;;  %v257_v20 = vadd.f32 %v563_v18, %v425_v16  ;;  %v216_v21 = vpop.f32.mrb[1].mxu0  ;;  %v248_v22 = vpop.f32.mrb[1].mxu1 }
 0x11d   :  { %v217_v23 = vadd.f32 %v425_v16, %v216_v21  ;;  %v249_v24 = vadd.f32 %v425_v16, %v248_v22  ;;  %v556_v25 = vpop.f32.mrb[2].mxu0  ;;  %v564_v26 = vpop.f32.mrb[2].mxu1 }
 0x11e   :  { %v281_v27 = vmax.f32 %v225_v19, 0.0  ;;  %v289_v28 = vmax.f32 %v257_v20, 0.0  ;;  %v228_v29 = vadd.f32 %v556_v25, %v425_v16  ;;  %v260_v30 = vadd.f32 %v564_v26, %v425_v16  ;;  %v219_v31 = vpop.f32.mrb[3].mxu0  ;;  %v251_v32 = vpop.f32.mrb[3].mxu1 }
 0x11f   :  { %v279_v33 = vmax.f32 %v217_v23, 0.0  ;;  %v287_v34 = vmax.f32 %v249_v24, 0.0  ;;  %v220_v35 = vadd.f32 %v425_v16, %v219_v31  ;;  %v252_v36 = vadd.f32 %v425_v16, %v251_v32 }
 0x120   :  { %297 = vst [vmem:[#allocation7 + $0x10] sm:$0xff] %v281_v27  ;;  %305 = vst [vmem:[#allocation7 + $0x50] sm:$0xff] %v289_v28  ;;  %v282_v37 = vmax.f32 %v228_v29, 0.0  ;;  %v290_v38 = vmax.f32 %v260_v30, 0.0 }
 0x121   :  { %295 = vst [vmem:[#allocation7] sm:$0xff] %v279_v33  ;;  %303 = vst [vmem:[#allocation7 + $0x40] sm:$0xff] %v287_v34  ;;  %v280_v39 = vmax.f32 %v220_v35, 0.0  ;;  %v288_v40 = vmax.f32 %v252_v36, 0.0 }
 0x122   :  { %298 = vst [vmem:[#allocation7 + $0x18] sm:$0xff] %v282_v37  ;;  %v482_v41 = vpack.c.bf16 %v282_v37, %v281_v27  ;;  %306 = vst [vmem:[#allocation7 + $0x58] sm:$0xff] %v290_v38  ;;  %v502_v42 = vpack.c.bf16 %v290_v38, %v289_v28 }
 0x123   :  { %296 = vst [vmem:[#allocation7 + $0x8] sm:$0xff] %v280_v39  ;;  %v477_v43 = vpack.c.bf16 %v280_v39, %v279_v33  ;;  %304 = vst [vmem:[#allocation7 + $0x48] sm:$0xff] %v288_v40  ;;  %v497_v44 = vpack.c.bf16 %v288_v40, %v287_v34  ;;  %v559_v45 = vpop.f32.mrb[4].mxu0  ;;  %v567_v46 = vpop.f32.mrb[4].mxu1 }
 0x124   :  { %514 = vst [vmem:[#allocation8 + $0x8] sm:$0xff] %v482_v41   ;;  %518 = vst [vmem:[#allocation8 + $0x28] sm:$0xff] %v502_v42   ;;  %v241_v47 = vadd.f32 %v559_v45, %v425_v16  ;;  %v273_v48 = vadd.f32 %v567_v46, %v425_v16  ;;  %v232_v49 = vpop.f32.mrb[5].mxu0  ;;  %v264_v50 = vpop.f32.mrb[5].mxu1 }
 0x125   :  { %478 = vst [vmem:[#allocation8] sm:$0xff] %v477_v43   ;;  %517 = vst [vmem:[#allocation8 + $0x20] sm:$0xff] %v497_v44   ;;  %v233_v51 = vadd.f32 %v425_v16, %v232_v49  ;;  %v265_v52 = vadd.f32 %v425_v16, %v264_v50  ;;  %v560_v53 = vpop.f32.mrb[6].mxu0  ;;  %v568_v54 = vpop.f32.mrb[6].mxu1 }
 0x126   :  { %v285_v55 = vmax.f32 %v241_v47, 0.0  ;;  %v293_v56 = vmax.f32 %v273_v48, 0.0  ;;  %v244_v57 = vadd.f32 %v560_v53, %v425_v16  ;;  %v276_v58 = vadd.f32 %v568_v54, %v425_v16  ;;  %v235_v59 = vpop.f32.mrb[7].mxu0  ;;  %v267_v60 = vpop.f32.mrb[7].mxu1 }
 0x127   :  { %v283_v61 = vmax.f32 %v233_v51, 0.0  ;;  %v291_v62 = vmax.f32 %v265_v52, 0.0  ;;  %v236_v63 = vadd.f32 %v425_v16, %v235_v59  ;;  %v268_v0 = vadd.f32 %v425_v16, %v267_v60 }
 0x128   :  { %301 = vst [vmem:[#allocation7 + $0x30] sm:$0xff] %v285_v55  ;;  %309 = vst [vmem:[#allocation7 + $0x70] sm:$0xff] %v293_v56  ;;  %v286_v1 = vmax.f32 %v244_v57, 0.0  ;;  %v294_v2 = vmax.f32 %v276_v58, 0.0 }
 0x129   :  { %299 = vst [vmem:[#allocation7 + $0x20] sm:$0xff] %v283_v61  ;;  %307 = vst [vmem:[#allocation7 + $0x60] sm:$0xff] %v291_v62  ;;  %v284_v3 = vmax.f32 %v236_v63, 0.0  ;;  %v292_v4 = vmax.f32 %v268_v0, 0.0 }
 0x12a   :  { %302 = vst [vmem:[#allocation7 + $0x38] sm:$0xff] %v286_v1  ;;  %v492_v5 = vpack.c.bf16 %v286_v1, %v285_v55  ;;  %310 = vst [vmem:[#allocation7 + $0x78] sm:$0xff] %v294_v2  ;;  %v512_v6 = vpack.c.bf16 %v294_v2, %v293_v56 }
 0x12b   :  { %300 = vst [vmem:[#allocation7 + $0x28] sm:$0xff] %v284_v3  ;;  %v487_v7 = vpack.c.bf16 %v284_v3, %v283_v61  ;;  %308 = vst [vmem:[#allocation7 + $0x68] sm:$0xff] %v292_v4  ;;  %v507_v8 = vpack.c.bf16 %v292_v4, %v291_v62 }
 0x12c   :  { %516 = vst [vmem:[#allocation8 + $0x18] sm:$0xff] %v492_v5   ;;  %520 = vst [vmem:[#allocation8 + $0x38] sm:$0xff] %v512_v6  }
 0x12d   :  { %664 = shalt.err (!%p661_p6)
}
 0x12e   :  { %s665_s21 = scalar_lea.hbm %s815_s3, 2048 }
 0x12f   :  { %p666_p7 = scmp.ne.s32.totalorder %s815_s3, %s665_s21  ;;  %p669_p8 = scmp.lt.u32.totalorder %s665_s21, %s815_s3 }
 0x131   :  { %p671_p9 = pnand %p669_p8, %p666_p7 }
 0x133   :  { %674 = shalt.err (!%p671_p9)
}
 0x134   :  { %s711_s28 = smov 128   ;;  %s712_s29 = smov 8   ;;  %515 = vst [vmem:[#allocation8 + $0x10] sm:$0xff] %v487_v7   ;;  %519 = vst [vmem:[#allocation8 + $0x30] sm:$0xff] %v507_v8  }
 0x135   :  { %402 = dma.vmem_to_hbm [thread:$0]  %s771_s15, 2048, %s815_s3, [#allocation4], %s711_s28, %s711_s28, %s712_s29  }
 0x136   :  { %s675_s6 = scalar_lea.vmem %s773_s17, 1024  ;;  %p680_p11 = scmp.lt.s32.totalorder %s773_s17, %s773_s17 }
 0x137   :  { %p676_p10 = scmp.ne.s32.totalorder %s773_s17, %s675_s6  ;;  %p681_p12 = scmp.lt.s32.totalorder %s675_s6, %s675_s6 }
 0x139   :  { %p682_p13 = por %p681_p12, %p680_p11 }
 0x13b   :  { %p683_p0 = pnand %p682_p13, %p676_p10 }
 0x13d   :  { %686 = shalt.err (!%p683_p0)
}
 0x13e   :  { %s687_s9 = scalar_lea.hbm %s816_s4, 1024 }
 0x13f   :  { %p688_p1 = scmp.ne.s32.totalorder %s816_s4, %s687_s9  ;;  %p691_p2 = scmp.lt.u32.totalorder %s687_s9, %s816_s4 }
 0x141   :  { %p693_p3 = pnand %p691_p2, %p688_p1 }
 0x143   :  { %696 = shalt.err (!%p693_p3)
}
 0x144   :  { %414 = dma.vmem_to_hbm [thread:$0]  %s773_s17, 1024, %s816_s4, [#allocation9], %s706_s25, %s706_s25, %s707_s26  }
 0x145   :  { %701 = dma.done.wait [#allocation4], 2048  }
 0x146   :  { %702 = vsyncadd [#allocation4], 4294965248 }
 0x147   :  { %703 = dma.done.wait [#allocation9], 1024  }
 0x148   :  { %704 = vsyncadd [#allocation9], 4294966272 }
 0x149   :  { %421 = vsyncpa [#allocation3], 1 }
 0x14a   :  { %422 = vsyncpa [#allocation6], 1 }
 0x14b   :  { %423 = vsyncpa [#allocation4], 1 }
 0x14c   :  { %424 = vsyncpa [#allocation9], 1 }

</bundles_post_ra>
